<compile_context>
chip_gen: v6e
topology: v6e:2x2x1
jax: 0.10.0
libtpu: 0.0.40
codegen_flags: <defaults>
</compile_context>

<pallas_src>
import functools

import jax
import jax.numpy as jnp
from jax.experimental import pallas as pl
from jax.experimental.pallas import tpu as pltpu


def _round_up(x, m):
    return ((x + m - 1) // m) * m


def _top_virtual_loss_kernel(logits_ref, targets_ref,
                             post_ref, pred_ref, nll_ref, corr_ref,
                             *, n_actual, b_actual, tb, n_pad):
    i = pl.program_id(0)
    x = logits_ref[...].astype(jnp.float32)                      # [TB, Np]

    col = jax.lax.broadcasted_iota(jnp.int32, (tb, n_pad), 1)    # class id per lane
    if n_pad != n_actual:
        # Mask padded class columns so they never win softmax / argmax.
        x = jnp.where(col < n_actual, x, jnp.float32(-1e30))

    # ---- softmax posterior (self.posterior) ----
    m = jnp.max(x, axis=-1, keepdims=True)                       # [TB, 1]  (XLU; reused below)
    e = jnp.exp(x - m)                                           # [TB, Np] (EUP)
    s = jnp.sum(e, axis=-1, keepdims=True)                       # [TB, 1]
    inv_s = pl.reciprocal(s, approx=True)                        # EUP slot, ~free
    post_ref[...] = (e * inv_s).astype(post_ref.dtype)

    # ---- cross-entropy: nll = log_z - x[target] (no one-hot HBM stream) ----
    tgt = targets_ref[...]                                       # [TB, 1] int32
    x_t = jnp.sum(jnp.where(col == tgt, x, 0.0), axis=-1, keepdims=True)
    log_z = jnp.log(s) + m                                       # [TB, 1]
    nll = log_z - x_t                                            # [TB, 1]

    # ---- predict(): first argmax index over class dim (reuses m) ----
    pred = jnp.min(jnp.where(x == m, col, n_pad), axis=-1, keepdims=True)
    pred_ref[...] = pred

    # ---- per-row partials; padded batch rows masked out; reduced in wrapper ----
    row = jax.lax.broadcasted_iota(jnp.int32, (tb, 1), 0) + i * tb
    valid = (row < b_actual).astype(jnp.float32)
    nll_ref[...] = nll * valid
    corr_ref[...] = (pred == tgt).astype(jnp.float32) * valid


def top_virtual_loss_forward(logits_bn1, targets):
    """logits_bn1: [B, N, 1] affine outputs (any float dtype; bf16 kept as bf16)
       targets:    [B] integer class ids
       returns (loss, posterior [B, N], prediction [B], accuracy)"""
    logits = jnp.squeeze(logits_bn1, axis=-1)                    # keep native dtype
    B, N = logits.shape

    n_pad = _round_up(N, 128)                                    # lane-dense posterior stores
    itemsize = jnp.dtype(logits.dtype).itemsize
    # TB: biggest batch tile whose double-buffered in+out blocks stay < ~12 MiB
    # (fits default scoped VMEM on v5e/v6e/v7x), capped at 512 rows.
    per_row_bytes = 2 * n_pad * (itemsize + itemsize) + 64
    tb = max(8, min(512, (12 * 1024 * 1024) // per_row_bytes // 8 * 8))
    tb = min(tb, _round_up(B, 8))
    b_pad = _round_up(B, tb)
    nb = b_pad // tb

    logits_p = jnp.pad(logits, ((0, b_pad - B), (0, n_pad - N)))
    targets_p = jnp.pad(targets.astype(jnp.int32), (0, b_pad - B),
                        constant_values=-1).reshape(b_pad, 1)

    kernel = functools.partial(_top_virtual_loss_kernel,
                               n_actual=N, b_actual=B, tb=tb, n_pad=n_pad)

    # TODO(synk): for face-recognition-scale class counts (N >> VMEM), also tile
    # the class axis with an online log-sum-exp (grid=(B/TB, N/TN), N last and
    # "arbitrary"); here the full (padded) class axis is one lane-dense block.
    post, pred, nll, corr = pl.pallas_call(
        kernel,
        grid=(nb,),
        in_specs=[
            pl.BlockSpec((tb, n_pad), lambda i: (i, 0)),          # logits tile
            pl.BlockSpec((tb, 1), lambda i: (i, 0)),              # targets tile
        ],
        out_specs=(
            pl.BlockSpec((tb, n_pad), lambda i: (i, 0)),          # posterior
            pl.BlockSpec((tb, 1), lambda i: (i, 0)),              # prediction
            pl.BlockSpec((tb, 1), lambda i: (i, 0)),              # per-row nll
            pl.BlockSpec((tb, 1), lambda i: (i, 0)),              # per-row correct
        ),
        out_shape=(
            jax.ShapeDtypeStruct((b_pad, n_pad), logits.dtype),
            jax.ShapeDtypeStruct((b_pad, 1), jnp.int32),
            jax.ShapeDtypeStruct((b_pad, 1), jnp.float32),
            jax.ShapeDtypeStruct((b_pad, 1), jnp.float32),
        ),
        compiler_params=pltpu.CompilerParams(
            dimension_semantics=("parallel",),       # megacore-shard batch on v7x
            vmem_limit_bytes=32 * 1024 * 1024,
        ),
    )(logits_p, targets_p)

    # Final reductions use the GLOBAL batch size B (padded rows already zeroed).
    loss = jnp.sum(nll) / B
    acc = jnp.sum(corr) / B
    return loss, post[:B, :N], pred[:B, 0], acc


if __name__ == "__main__":
    key = jax.random.PRNGKey(0)
    B, N = 8, 32                                     # batch-size, n classes
    k1, k2 = jax.random.split(key)
    logits = jax.random.normal(k1, (B, N, 1), dtype=jnp.float32)   # [batch, n, 1]
    targets = jax.random.randint(k2, (B,), 0, N, dtype=jnp.int32)

    loss, posterior, prediction, accuracy = top_virtual_loss_forward(logits, targets)
    jax.block_until_ready((loss, posterior, prediction, accuracy))

    # self-check against plain JAX reference
    x = jnp.squeeze(logits, -1)
    ref_logp = jax.nn.log_softmax(x, axis=-1)
    ref_loss = -jnp.mean(ref_logp[jnp.arange(B), targets])
    ref_post = jax.nn.softmax(x, axis=-1)
    ref_pred = jnp.argmax(x, axis=-1)
    ref_acc = jnp.mean((ref_pred == targets).astype(jnp.float32))

    assert jnp.allclose(loss, ref_loss, atol=1e-5), (loss, ref_loss)
    # posterior normalized with the approximate EUP reciprocal -> looser tol
    assert jnp.allclose(posterior, ref_post, atol=2e-3), "posterior mismatch"
    assert jnp.all(prediction == ref_pred), "prediction mismatch"
    assert jnp.allclose(accuracy, ref_acc), (accuracy, ref_acc)

    print("KERNEL_OK")
</pallas_src>

<mosaic_0001>
module attributes {stable_mosaic.version = 11 : i64} {
  func.func @_top_virtual_loss_kernel(%arg0: i32, %arg1: memref<8x128xf32, #tpu.memory_space<vmem>>, %arg2: memref<8x1xi32, #tpu.memory_space<vmem>>, %arg3: memref<8x128xf32, #tpu.memory_space<vmem>>, %arg4: memref<8x1xi32, #tpu.memory_space<vmem>>, %arg5: memref<8x1xf32, #tpu.memory_space<vmem>>, %arg6: memref<8x1xf32, #tpu.memory_space<vmem>>) attributes {dimension_semantics = [#tpu.dimension_semantics<parallel>], iteration_bounds = array<i64: 1>, scalar_prefetch = 0 : i64, scratch_operands = 0 : i64, tpu.core_type = #tpu.core_type<tc>, window_params = [{transform_indices = @transform_0, window_bounds = array<i64: 8, 128>}, {transform_indices = @transform_1, window_bounds = array<i64: 8, 1>}, {transform_indices = @transform_2, window_bounds = array<i64: 8, 128>}, {transform_indices = @transform_3, window_bounds = array<i64: 8, 1>}, {transform_indices = @transform_4, window_bounds = array<i64: 8, 1>}, {transform_indices = @transform_5, window_bounds = array<i64: 8, 1>}]} {
    %c0 = arith.constant 0 : index
    %c0_0 = arith.constant 0 : index
    %0 = vector.load %arg1[%c0, %c0_0] : memref<8x128xf32, #tpu.memory_space<vmem>>, vector<8x128xf32>
    %1 = tpu.iota {dimensions = array<i32: 1>} : vector<8x128xi32>
    %c32_i32 = arith.constant 32 : i32
    %2 = vector.broadcast %c32_i32 : i32 to vector<8x128xi32>
    %3 = arith.cmpi slt, %1, %2 : vector<8x128xi32>
    %cst = arith.constant -1.000000e+30 : f32
    %4 = vector.broadcast %cst : f32 to vector<8x128xf32>
    %5 = arith.select %3, %0, %4 : vector<8x128xi1>, vector<8x128xf32>
    %cst_1 = arith.constant dense<0xFF800000> : vector<8xf32>
    %6 = vector.multi_reduction <maximumf>, %5, %cst_1 [1] : vector<8x128xf32> to vector<8xf32>
    %7 = vector.shape_cast %6 : vector<8xf32> to vector<8x1xf32>
    %8 = vector.broadcast %7 : vector<8x1xf32> to vector<8x128xf32>
    %9 = arith.subf %5, %8 : vector<8x128xf32>
    %10 = math.exp %9 : vector<8x128xf32>
    %cst_2 = arith.constant dense<0.000000e+00> : vector<8xf32>
    %11 = vector.multi_reduction <add>, %10, %cst_2 [1] : vector<8x128xf32> to vector<8xf32>
    %12 = vector.shape_cast %11 : vector<8xf32> to vector<8x1xf32>
    %13 = tpu.reciprocal %12 {approx = true} : vector<8x1xf32> -> vector<8x1xf32>
    %14 = vector.broadcast %13 : vector<8x1xf32> to vector<8x128xf32>
    %15 = arith.mulf %10, %14 : vector<8x128xf32>
    %c0_3 = arith.constant 0 : index
    %c0_4 = arith.constant 0 : index
    %16 = vector.load %arg3[%c0_3, %c0_4] : memref<8x128xf32, #tpu.memory_space<vmem>>, vector<8x128xf32>
    tpu.vector_store %arg3[%c0_3, %c0_4], %15 {strides = array<i32>} : memref<8x128xf32, #tpu.memory_space<vmem>>, vector<8x128xf32>,
    %c0_5 = arith.constant 0 : index
    %c0_6 = arith.constant 0 : index
    %17 = vector.load %arg2[%c0_5, %c0_6] : memref<8x1xi32, #tpu.memory_space<vmem>>, vector<8x1xi32>
    %18 = vector.broadcast %17 : vector<8x1xi32> to vector<8x128xi32>
    %19 = arith.cmpi eq, %1, %18 : vector<8x128xi32>
    %cst_7 = arith.constant 0.000000e+00 : f32
    %20 = vector.broadcast %cst_7 : f32 to vector<8x128xf32>
    %21 = arith.select %19, %5, %20 : vector<8x128xi1>, vector<8x128xf32>
    %cst_8 = arith.constant dense<0.000000e+00> : vector<8xf32>
    %22 = vector.multi_reduction <add>, %21, %cst_8 [1] : vector<8x128xf32> to vector<8xf32>
    %23 = vector.shape_cast %22 : vector<8xf32> to vector<8x1xf32>
    %24 = math.log %12 : vector<8x1xf32>
    %25 = arith.addf %24, %7 : vector<8x1xf32>
    %26 = arith.subf %25, %23 : vector<8x1xf32>
    %27 = vector.broadcast %7 : vector<8x1xf32> to vector<8x128xf32>
    %28 = arith.cmpf oeq, %5, %27 : vector<8x128xf32>
    %c128_i32 = arith.constant 128 : i32
    %29 = vector.broadcast %c128_i32 : i32 to vector<8x128xi32>
    %30 = arith.select %28, %1, %29 : vector<8x128xi1>, vector<8x128xi32>
    %cst_9 = arith.constant dense<2147483647> : vector<8xi32>
    %31 = vector.multi_reduction <minsi>, %30, %cst_9 [1] : vector<8x128xi32> to vector<8xi32>
    %32 = vector.shape_cast %31 : vector<8xi32> to vector<8x1xi32>
    %c0_10 = arith.constant 0 : index
    %c0_11 = arith.constant 0 : index
    %33 = vector.load %arg4[%c0_10, %c0_11] : memref<8x1xi32, #tpu.memory_space<vmem>>, vector<8x1xi32>
    tpu.vector_store %arg4[%c0_10, %c0_11], %32 {strides = array<i32>} : memref<8x1xi32, #tpu.memory_space<vmem>>, vector<8x1xi32>,
    %34 = tpu.iota {dimensions = array<i32: 0>} : vector<8x1xi32>
    %c8_i32 = arith.constant 8 : i32
    %35 = arith.muli %arg0, %c8_i32 : i32
    %36 = vector.broadcast %35 : i32 to vector<8x1xi32>
    %37 = arith.addi %34, %36 : vector<8x1xi32>
    %c8_i32_12 = arith.constant 8 : i32
    %38 = vector.broadcast %c8_i32_12 : i32 to vector<8x1xi32>
    %39 = arith.cmpi slt, %37, %38 : vector<8x1xi32>
    %40 = arith.extui %39 : vector<8x1xi1> to vector<8x1xi32>
    %41 = arith.sitofp %40 : vector<8x1xi32> to vector<8x1xf32>
    %42 = arith.mulf %26, %41 : vector<8x1xf32>
    %c0_13 = arith.constant 0 : index
    %c0_14 = arith.constant 0 : index
    %43 = vector.load %arg5[%c0_13, %c0_14] : memref<8x1xf32, #tpu.memory_space<vmem>>, vector<8x1xf32>
    tpu.vector_store %arg5[%c0_13, %c0_14], %42 {strides = array<i32>} : memref<8x1xf32, #tpu.memory_space<vmem>>, vector<8x1xf32>,
    %44 = arith.cmpi eq, %32, %17 : vector<8x1xi32>
    %45 = arith.extui %44 : vector<8x1xi1> to vector<8x1xi32>
    %46 = arith.sitofp %45 : vector<8x1xi32> to vector<8x1xf32>
    %47 = arith.mulf %46, %41 : vector<8x1xf32>
    %c0_15 = arith.constant 0 : index
    %c0_16 = arith.constant 0 : index
    %48 = vector.load %arg6[%c0_15, %c0_16] : memref<8x1xf32, #tpu.memory_space<vmem>>, vector<8x1xf32>
    tpu.vector_store %arg6[%c0_15, %c0_16], %47 {strides = array<i32>} : memref<8x1xf32, #tpu.memory_space<vmem>>, vector<8x1xf32>,
    return
  }
  func.func @transform_0(%arg0: i32) -> (i32, i32) {
    %c0_i32 = arith.constant 0 : i32
    %c0_i32_0 = arith.constant 0 : i32
    return %arg0, %c0_i32 : i32, i32
  }
  func.func @transform_1(%arg0: i32) -> (i32, i32) {
    %c0_i32 = arith.constant 0 : i32
    %c0_i32_0 = arith.constant 0 : i32
    return %arg0, %c0_i32 : i32, i32
  }
  func.func @transform_2(%arg0: i32) -> (i32, i32) {
    %c0_i32 = arith.constant 0 : i32
    %c0_i32_0 = arith.constant 0 : i32
    return %arg0, %c0_i32 : i32, i32
  }
  func.func @transform_3(%arg0: i32) -> (i32, i32) {
    %c0_i32 = arith.constant 0 : i32
    %c0_i32_0 = arith.constant 0 : i32
    return %arg0, %c0_i32 : i32, i32
  }
  func.func @transform_4(%arg0: i32) -> (i32, i32) {
    %c0_i32 = arith.constant 0 : i32
    %c0_i32_0 = arith.constant 0 : i32
    return %arg0, %c0_i32 : i32, i32
  }
  func.func @transform_5(%arg0: i32) -> (i32, i32) {
    %c0_i32 = arith.constant 0 : i32
    %c0_i32_0 = arith.constant 0 : i32
    return %arg0, %c0_i32 : i32, i32
  }
}

</mosaic_0001>

<bundles_post_ra>
// kernel: tpu_custom_call.1
= control target key start
LH: loop header
LB: loop body
LE: loop exit
PB: predicated region body
PF: predicated region fallthrough
CT: control target
= control target key end

     0   :  { %v17_v0 = vlaneseq  ;;  %s191_s0 = inlined_call_operand.vmem [shape: f32[8,128], index: 0, kind: input, shape index: {}]   ;;  %s192_s1 = inlined_call_operand.vmem [shape: s32[8,1], index: 1, kind: input, shape index: {}]   ;;  %s193_s2 = inlined_call_operand.hbm [shape: f32[8,128], index: 2, kind: output, shape index: {0}]   ;;  %s194_s3 = inlined_call_operand.vmem [shape: s32[8,1], index: 3, kind: output, shape index: {1}]   ;;  %s195_s4 = inlined_call_operand.vmem [shape: f32[8,1], index: 4, kind: output, shape index: {2}]   ;;  %s196_s5 = inlined_call_operand.vmem [shape: f32[8,1], index: 5, kind: output, shape index: {3}]  }
   0x1   :  { %v172_v1 = vld [vmem:[%s192_s1] sm:$0xff] }
   0x2   :  { %11 = vsyncpa [#allocation3], 0  ;;  %v136_v2 = vmov 0   ;;  %v16_v3 = vld [vmem:[%s191_s0] sm:$0xff]  ;;  %v18_v4 = vand.u32 127, %v17_v0  ;;  %s137_s0 = smov [#allocation2]  }
   0x3   :  { %106 = vset.pattern.permute.xlu1 %v136_v2  ;;  %107 = vset.pattern.permute.xlu0 %v136_v2  ;;  %s82_s1 = sshll.u32 %s137_s0, 4  ;;  %s83_s1 = int_to_ptr.vmem [resolvable:$true] %s82_s1 }
   0x4   :  { %33 = vperm.xlu1 %106, %v172_v1   ;;  %vm19_vm0 = vcmp.lt.s32.totalorder %v18_v4, 32  ;;  %s114_s22 = scalar_lea.vmem %s83_s1, 128  ;;  %p119_p1 = scmp.lt.s32.totalorder %s83_s1, %s83_s1 }
   0x5   :  { %v20_v5 = vsel %vm19_vm0, %v16_v3, -1e+30  ;;  %p115_p0 = scmp.ne.s32.totalorder %s83_s1, %s114_s22  ;;  %p120_p2 = scmp.lt.s32.totalorder %s114_s22, %s114_s22 }
   0x6   :  { %21 = vmax.xlane.f32.xlu0 %v20_v5 }
   0x7   :  { %p121_p3 = por %p120_p2, %p119_p1 }
   0x9   :  { %p122_p4 = pnand %p121_p3, %p115_p0 }
  0x7f   :  { %v34_v14 = vpop.permute.xlu1 %33 }
  0x80   :  { %vm35_vm3 = vcmp.eq.s32.totalorder %v18_v4, %v34_v14 }
  0x81   :  { %v36_v18 = vsel %vm35_vm3, %v20_v5, 0.0 }
  0x8f   :  { %v22_v6 = vpop.xlane.xlu0 %21 }
  0x90   :  { %v23_v7 = vsub.f32 %v20_v5, %v22_v6  ;;  %vm43_vm1 = vcmp.eq.f32.partialorder %v20_v5, %v22_v6 }
  0x91   :  { %v44_v8 = vsel %vm43_vm1, %v18_v4, 128 }
  0x92   :  { %v24_v9 = vmul.f32 1.442695, %v23_v7  ;;  %v46_v10 = vshra.s32 %v44_v8, 16  ;;  %v45_v13 = vand.u32 65535, %v44_v8 }
  0x94   :  { %108 = vpow2.f32 %v24_v9  ;;  %v48_v11 = vcvt.s32.f32 %v46_v10  ;;  %v47_v16 = vcvt.s32.f32 %v45_v13 }
  0x96   :  { %49 = vmin.xlane.f32.xlu0 %v48_v11 }
  0xa1   :  { %v109_v12 = vpop.eup %108 }
  0xa2   :  { %26 = vadd.xlane.f32.xlu1 %v109_v12 }
 0x11f   :  { %v50_v15 = vpop.xlane.xlu0 %49 }
 0x120   :  { %vm51_vm2 = vcmp.eq.f32.partialorder %v48_v11, %v50_v15 }
 0x121   :  { %v52_v17 = vsel %vm51_vm2, %v47_v16, inf }
 0x122   :  { %53 = vmin.xlane.f32.xlu0 %v52_v17 }
 0x126   :  { %37 = vadd.xlane.f32.xlu0 %v36_v18 }
 0x12b   :  { %v27_v19 = vpop.xlane.xlu1 %26 }
 0x12c   :  { %110 = vrcp.f32 %v27_v19 }
 0x139   :  { %v111_v20 = vpop.eup %110 }
 0x13a   :  { %v29_v21 = vmul.f32 %v111_v20, %v109_v12 }
 0x13c   :  { %30 = vst [vmem:[#allocation2] sm:$0xff] %v29_v21 }
 0x13d   :  { %125 = shalt.err (!%p122_p4)
}
 0x13e   :  { %85 = dma.vmem_to_hbm [thread:$0]  %s83_s1, 128, %s193_s2, [#allocation3]   ;;  %112 = vlog2.f32 %v27_v19  ;;  %v56_v23 = vcvt.f32.s32 %v50_v15  ;;  %vm59_vm4 = vcmask 7168   ;;  %v138_v32 = vmov 0.0  }
 0x140   :  { %v57_v26 = vshll.u32 %v56_v23, 16 }
 0x14b   :  { %v113_v22 = vpop.eup %112 }
 0x14c   :  { %v40_v24 = vmul.f32 0.6931472, %v113_v22 }
 0x14e   :  { %v41_v29 = vadd.f32 %v40_v24, %v22_v6 }
 0x1ab   :  { %v54_v25 = vpop.xlane.xlu0 %53 }
 0x1ac   :  { %v55_v27 = vcvt.f32.s32 %v54_v25 }
 0x1ae   :  { %v58_v28 = vadd.s32 %v57_v26, %v55_v27 }
 0x1af   :  { %v38_v30 = vpop.xlane.xlu0 %37 }
 0x1b0   :  { %60 = vst.msk [vmem:[%s194_s3] sm:$0xff] %vm59_vm4, %v58_v28  ;;  %vm71_vm5 = vcmp.eq.s32.totalorder %v58_v28, %v172_v1  ;;  %v42_v31 = vsub.f32 %v41_v29, %v38_v30 }
 0x1b1   :  { %v102_v33 = vsel %vm71_vm5, 1.0, %v138_v32 }
 0x1b2   :  { %75 = vst.msk [vmem:[%s196_s5] sm:$0xff] %vm59_vm4, %v102_v33  ;;  %70 = vst.msk [vmem:[%s195_s4] sm:$0xff] %vm59_vm4, %v42_v31 }
 0x1b3   :  { %134 = dma.done.wait [#allocation3], 128  }
 0x1b4   :  { %135 = vsyncadd [#allocation3], 4294967168 }
 0x1b5   :  { %101 = vsyncpa [#allocation3], 1 }

</bundles_post_ra>
